<compile_context>
chip_gen: v6e
topology: v6e:2x2x1
jax: 0.10.0
libtpu: 0.0.40
codegen_flags: <defaults>
</compile_context>

<pallas_src>
import jax
import jax.numpy as jnp
from jax import lax
from jax.experimental import pallas as pl
from jax.experimental.pallas import tpu as pltpu

# ----- module hyperparameters (PosteriorEncoder.__init__ args) -----
IN_CHANNELS = 8
OUT_CHANNELS = 4
HIDDEN = 16
KERNEL_SIZE = 3
DILATION_RATE = 2
N_LAYERS = 2
GIN_CHANNELS = 0          # g=None path (no conditioning)

B = 2
T = 128                   # multiple of 128 -> lane-dense time axis
DTYPE = jnp.float32


def posterior_encoder_kernel(
    x_ref,        # (Cin+1, T)  input with a ones-row appended (bias fold)
    mask_ref,     # (1, T)      sequence mask for this batch element
    noise_ref,    # (C, T)      randn noise for z
    pre_w_ref,    # (H, Cin+1)        [pre_w | pre_b]
    in_w_ref,     # (L, 2H, K*H+1)    [tanh|sigmoid rows, taps+bias cols]
    rs_w_ref,     # (L, 2H, H+1)      [res|skip rows, acts+bias cols]
    projm_w_ref,  # (C, H+1)          [proj_m | bias]
    projs_w_ref,  # (C, H+1)          [proj_logs | bias]
    z_ref, m_ref, logs_ref,   # each (C, T)
):
    H, C, L, K = HIDDEN, OUT_CHANNELS, N_LAYERS, KERNEL_SIZE

    mask1 = mask_ref[...]                                   # (1, T)
    mask_h = jnp.broadcast_to(mask1, (H, T))                # hoisted, done once
    ones_row = jnp.ones((1, T), jnp.float32)                # bias-fold row
    tvec = lax.broadcasted_iota(jnp.int32, (1, T), 1)       # time index on lanes

    # pre (1x1 conv, bias folded into weight) * mask
    h = jnp.dot(pre_w_ref[...], x_ref[...],
                preferred_element_type=jnp.float32) * mask_h      # (H, T)

    # WN stack (gin_channels == 0 -> no conditioning term)
    skip_sum = jnp.zeros((H, T), jnp.float32)
    for i in range(L):
        d = DILATION_RATE ** i
        pad = d * (K - 1) // 2

        # K dilated taps as lane-rolled copies of h (XLU), with the [0, T)
        # conv zero-padding applied via a single compare-pair per tap.
        taps = []
        for j in range(K):
            off = j * d - pad
            if off == 0:
                taps.append(h)
                continue
            rolled = pltpu.roll(h, shift=(-off) % T, axis=1)
            lo = max(0, -off)
            hi = T - max(0, off)
            valid = (tvec >= lo) & (tvec < hi)
            taps.append(jnp.where(valid, rolled, 0.0))
        hcat = jnp.concatenate(taps + [ones_row], axis=0)          # (K*H+1, T)

        # One fused matmul per layer: all taps x [tanh | sigmoid], bias folded.
        pre_act = jnp.dot(in_w_ref[i], hcat,
                          preferred_element_type=jnp.float32)      # (2H, T)
        # fused_add_tanh_sigmoid_multiply (H=16 slices are sublane-aligned)
        acts = jnp.tanh(pre_act[:H]) * jax.nn.sigmoid(pre_act[H:])

        # Fused res/skip matmul, bias folded via ones-row.
        acts1 = jnp.concatenate([acts, ones_row], axis=0)          # (H+1, T)
        rs = jnp.dot(rs_w_ref[i], acts1,
                     preferred_element_type=jnp.float32)           # (2H, T)
        if i < L - 1:
            h = (h + rs[:H]) * mask_h
        skip_sum = skip_sum + rs[H:]

    # proj (1x1 conv) * mask; two small matmuls keep m/logs sublane-aligned.
    xo1 = jnp.concatenate([skip_sum * mask_h, ones_row], axis=0)   # (H+1, T)
    m = jnp.dot(projm_w_ref[...], xo1,
                preferred_element_type=jnp.float32) * mask1        # (C, T)
    logs = jnp.dot(projs_w_ref[...], xo1,
                   preferred_element_type=jnp.float32) * mask1     # (C, T)

    # z = (m + randn * exp(logs)) * mask     (noise generated host-side)
    # TODO(synk): could use pltpu.prng_seed/prng_random_bits in-kernel if
    # bitwise parity with an external noise source is not required.
    z = (m + noise_ref[...] * jnp.exp(logs)) * mask1

    z_ref[...] = z
    m_ref[...] = m
    logs_ref[...] = logs


def init_params(key):
    ks = jax.random.split(key, 8)
    s = 0.1
    return {
        "pre_w":  s * jax.random.normal(ks[0], (HIDDEN, IN_CHANNELS), DTYPE),
        "pre_b":  s * jax.random.normal(ks[1], (HIDDEN,), DTYPE),
        "in_w":   s * jax.random.normal(
            ks[2], (N_LAYERS, 2 * HIDDEN, HIDDEN, KERNEL_SIZE), DTYPE),
        "in_b":   s * jax.random.normal(ks[3], (N_LAYERS, 2 * HIDDEN), DTYPE),
        # TODO(synk): real PyTorch WN checkpoints have only H (skip) outputs
        # for the last res_skip layer; pack_params needs a shape-aware path
        # when loading real weights (synthetic init uses full 2H everywhere).
        "rs_w":   s * jax.random.normal(ks[4], (N_LAYERS, 2 * HIDDEN, HIDDEN), DTYPE),
        "rs_b":   s * jax.random.normal(ks[5], (N_LAYERS, 2 * HIDDEN), DTYPE),
        "proj_w": s * jax.random.normal(ks[6], (2 * OUT_CHANNELS, HIDDEN), DTYPE),
        "proj_b": s * jax.random.normal(ks[7], (2 * OUT_CHANNELS,), DTYPE),
    }


def pack_params(p):
    """Fuse taps / tanh-sigmoid / res-skip halves into dense matmul weights,
    folding every bias in as an extra weight column (ones-row trick)."""
    H, C, K, L = HIDDEN, OUT_CHANNELS, KERNEL_SIZE, N_LAYERS
    pre_w1 = jnp.concatenate([p["pre_w"], p["pre_b"][:, None]], axis=1)     # (H, Cin+1)
    in_w = []
    for i in range(L):
        w = jnp.concatenate([p["in_w"][i, :, :, j] for j in range(K)], axis=1)  # (2H, K*H)
        in_w.append(jnp.concatenate([w, p["in_b"][i][:, None]], axis=1))        # (2H, K*H+1)
    in_w = jnp.stack(in_w, axis=0)                                          # (L, 2H, K*H+1)
    rs_w = jnp.concatenate([p["rs_w"], p["rs_b"][..., None]], axis=2)       # (L, 2H, H+1)
    projm_w = jnp.concatenate([p["proj_w"][:C], p["proj_b"][:C, None]], axis=1)   # (C, H+1)
    projs_w = jnp.concatenate([p["proj_w"][C:], p["proj_b"][C:, None]], axis=1)   # (C, H+1)
    return pre_w1, in_w, rs_w, projm_w, projs_w


def posterior_encoder(x_nct, x_lengths, noise, p):
    """x_nct: (B, Cin, T) like PyTorch; returns (z, m, logs, x_mask) in NCT."""
    H, C, K, L = HIDDEN, OUT_CHANNELS, KERNEL_SIZE, N_LAYERS
    Cin1 = IN_CHANNELS + 1

    # Append the constant ones-row (bias fold) host-side; compute the
    # sequence mask host-side (pure function of x_lengths) and feed it in.
    x1 = jnp.concatenate([x_nct.astype(DTYPE), jnp.ones((B, 1, T), DTYPE)], axis=1)
    mask = (jnp.arange(T)[None, None, :] < x_lengths[:, None, None]).astype(DTYPE)
    noise = noise.astype(DTYPE)
    pre_w1, in_w, rs_w, projm_w, projs_w = pack_params(p)

    batched = lambda ch: pl.BlockSpec((None, ch, T), lambda b: (b, 0, 0))
    fixed2 = lambda s: pl.BlockSpec(s, lambda b: (0, 0))
    fixed3 = lambda s: pl.BlockSpec(s, lambda b: (0, 0, 0))

    z, m, logs = pl.pallas_call(
        posterior_encoder_kernel,
        out_shape=(
            jax.ShapeDtypeStruct((B, C, T), DTYPE),
            jax.ShapeDtypeStruct((B, C, T), DTYPE),
            jax.ShapeDtypeStruct((B, C, T), DTYPE),
        ),
        grid=(B,),
        in_specs=[
            batched(Cin1),                      # x (+ ones row)
            batched(1),                         # mask
            batched(C),                         # noise
            fixed2((H, Cin1)),                  # pre weight
            fixed3((L, 2 * H, K * H + 1)),      # in_layers weights
            fixed3((L, 2 * H, H + 1)),          # res_skip weights
            fixed2((C, H + 1)),                 # proj (m half)
            fixed2((C, H + 1)),                 # proj (logs half)
        ],
        out_specs=(batched(C), batched(C), batched(C)),
        compiler_params=pltpu.CompilerParams(
            dimension_semantics=("parallel",)),   # megacore split over batch
    )(x1, mask, noise, pre_w1, in_w, rs_w, projm_w, projs_w)

    return z, m, logs, mask


def reference(x_nct, x_lengths, noise, p):
    """Pure-JAX mirror of the PyTorch forward (same synthetic weights/noise)."""
    H, C, K, L = HIDDEN, OUT_CHANNELS, KERNEL_SIZE, N_LAYERS
    prec = lax.Precision.HIGHEST
    x = x_nct.astype(DTYPE)                                            # (B, Cin, T)
    mask = (jnp.arange(T)[None, None, :] < x_lengths[:, None, None]).astype(DTYPE)

    def shift(h, off):                   # h[..., t] -> h[..., t+off], zero pad
        if off == 0:
            return h
        z = jnp.zeros(h.shape[:-1] + (abs(off),), DTYPE)
        if off > 0:
            return jnp.concatenate([h[..., off:], z], axis=-1)
        return jnp.concatenate([z, h[..., :off]], axis=-1)

    h = (jnp.einsum("hc,bct->bht", p["pre_w"], x, precision=prec)
         + p["pre_b"][None, :, None]) * mask
    out = jnp.zeros_like(h)
    for i in range(L):
        d = DILATION_RATE ** i
        pad = d * (K - 1) // 2
        xin = jnp.zeros((B, 2 * H, T), DTYPE) + p["in_b"][i][None, :, None]
        for j in range(K):
            xin = xin + jnp.einsum("oh,bht->bot", p["in_w"][i, :, :, j],
                                   shift(h, j * d - pad), precision=prec)
        acts = jnp.tanh(xin[:, :H]) * jax.nn.sigmoid(xin[:, H:])
        rs = (jnp.einsum("oh,bht->bot", p["rs_w"][i], acts, precision=prec)
              + p["rs_b"][i][None, :, None])
        if i < L - 1:
            h = (h + rs[:, :H]) * mask
        out = out + rs[:, H:]
    xo = out * mask
    stats = (jnp.einsum("oh,bht->bot", p["proj_w"], xo, precision=prec)
             + p["proj_b"][None, :, None]) * mask
    m, logs = stats[:, :C], stats[:, C:]
    z = (m + noise * jnp.exp(logs)) * mask
    return z, m, logs, mask


if __name__ == "__main__":
    key = jax.random.PRNGKey(0)
    k_par, k_x, k_noise = jax.random.split(key, 3)

    params = init_params(k_par)
    x = jax.random.normal(k_x, (B, IN_CHANNELS, T), DTYPE)   # PyTorch NCT input
    x_lengths = jnp.array([T, T - 37], dtype=jnp.int32)
    # torch.randn_like(m) equivalent, generated host-side (NCT layout)
    noise = jax.random.normal(k_noise, (B, OUT_CHANNELS, T), DTYPE)

    z, m, logs, mask = posterior_encoder(x, x_lengths, noise, params)
    jax.block_until_ready((z, m, logs, mask))

    z_r, m_r, logs_r, mask_r = reference(x, x_lengths, noise, params)
    assert jnp.allclose(m, m_r, atol=2e-4), "m mismatch"
    assert jnp.allclose(logs, logs_r, atol=2e-4), "logs mismatch"
    assert jnp.allclose(z, z_r, atol=2e-4), "z mismatch"
    assert jnp.allclose(mask, mask_r, atol=1e-6), "mask mismatch"

    print("KERNEL_OK")
</pallas_src>

<mosaic_0001>
module attributes {stable_mosaic.version = 11 : i64} {
  func.func @posterior_encoder_kernel(%arg0: i32, %arg1: memref<1x9x128xf32, #tpu.memory_space<vmem>>, %arg2: memref<1x1x128xf32, #tpu.memory_space<vmem>>, %arg3: memref<1x4x128xf32, #tpu.memory_space<vmem>>, %arg4: memref<16x9xf32, #tpu.memory_space<vmem>>, %arg5: memref<2x32x49xf32, #tpu.memory_space<vmem>>, %arg6: memref<2x32x17xf32, #tpu.memory_space<vmem>>, %arg7: memref<4x17xf32, #tpu.memory_space<vmem>>, %arg8: memref<4x17xf32, #tpu.memory_space<vmem>>, %arg9: memref<1x4x128xf32, #tpu.memory_space<vmem>>, %arg10: memref<1x4x128xf32, #tpu.memory_space<vmem>>, %arg11: memref<1x4x128xf32, #tpu.memory_space<vmem>>) attributes {dimension_semantics = [#tpu.dimension_semantics<parallel>], iteration_bounds = array<i64: 2>, scalar_prefetch = 0 : i64, scratch_operands = 0 : i64, tpu.core_type = #tpu.core_type<tc>, window_params = [{transform_indices = @transform_0, window_bounds = array<i64: 1, 9, 128>}, {transform_indices = @transform_1, window_bounds = array<i64: 1, 1, 128>}, {transform_indices = @transform_2, window_bounds = array<i64: 1, 4, 128>}, {pipeline_mode = #tpu.pipeline_mode<synchronous>, transform_indices = @transform_3, window_bounds = array<i64: 16, 9>}, {pipeline_mode = #tpu.pipeline_mode<synchronous>, transform_indices = @transform_4, window_bounds = array<i64: 2, 32, 49>}, {pipeline_mode = #tpu.pipeline_mode<synchronous>, transform_indices = @transform_5, window_bounds = array<i64: 2, 32, 17>}, {pipeline_mode = #tpu.pipeline_mode<synchronous>, transform_indices = @transform_6, window_bounds = array<i64: 4, 17>}, {pipeline_mode = #tpu.pipeline_mode<synchronous>, transform_indices = @transform_7, window_bounds = array<i64: 4, 17>}, {transform_indices = @transform_8, window_bounds = array<i64: 1, 4, 128>}, {transform_indices = @transform_9, window_bounds = array<i64: 1, 4, 128>}, {transform_indices = @transform_10, window_bounds = array<i64: 1, 4, 128>}]} {
    %c0 = arith.constant 0 : index
    %c0_0 = arith.constant 0 : index
    %c0_1 = arith.constant 0 : index
    %0 = vector.load %arg2[%c0, %c0_0, %c0_1] : memref<1x1x128xf32, #tpu.memory_space<vmem>>, vector<1x1x128xf32>
    %1 = vector.shape_cast %0 : vector<1x1x128xf32> to vector<1x128xf32>
    %2 = vector.shape_cast %1 : vector<1x128xf32> to vector<1x128xf32>
    %3 = vector.broadcast %2 : vector<1x128xf32> to vector<16x128xf32>
    %cst = arith.constant 1.000000e+00 : f32
    %4 = vector.broadcast %cst : f32 to vector<1x128xf32>
    %5 = tpu.iota {dimensions = array<i32: 1>} : vector<1x128xi32>
    %c0_2 = arith.constant 0 : index
    %c0_3 = arith.constant 0 : index
    %6 = vector.load %arg4[%c0_2, %c0_3] : memref<16x9xf32, #tpu.memory_space<vmem>>, vector<16x9xf32>
    %c0_4 = arith.constant 0 : index
    %c0_5 = arith.constant 0 : index
    %c0_6 = arith.constant 0 : index
    %7 = vector.load %arg1[%c0_4, %c0_5, %c0_6] : memref<1x9x128xf32, #tpu.memory_space<vmem>>, vector<1x9x128xf32>
    %8 = vector.shape_cast %7 : vector<1x9x128xf32> to vector<9x128xf32>
    %cst_7 = arith.constant dense<0.000000e+00> : vector<16x128xf32>
    %9 = tpu.matmul %6, %8, %cst_7 {dimension_numbers = #tpu.dot_dimension_numbers<[1], [0], [0], [1], [0, 0, 1, 1], [], []>} : vector<16x9xf32>, vector<9x128xf32>, vector<16x128xf32> -> vector<16x128xf32>
    %10 = arith.mulf %9, %3 : vector<16x128xf32>
    %cst_8 = arith.constant 0.000000e+00 : f32
    %11 = vector.broadcast %cst_8 : f32 to vector<16x128xf32>
    %c1_i32 = arith.constant 1 : i32
    %12 = tpu.dynamic_rotate %10 by %c1_i32 dim 1 : vector<16x128xf32>, i32 -> vector<16x128xf32>
    %c1_i32_9 = arith.constant 1 : i32
    %13 = vector.broadcast %c1_i32_9 : i32 to vector<1x128xi32>
    %14 = arith.cmpi sge, %5, %13 : vector<1x128xi32>
    %c128_i32 = arith.constant 128 : i32
    %15 = vector.broadcast %c128_i32 : i32 to vector<1x128xi32>
    %16 = arith.cmpi slt, %5, %15 : vector<1x128xi32>
    %17 = arith.andi %14, %16 : vector<1x128xi1>
    %cst_10 = arith.constant 0.000000e+00 : f32
    %18 = vector.shape_cast %17 : vector<1x128xi1> to vector<1x128xi1>
    %19 = vector.broadcast %18 : vector<1x128xi1> to vector<16x128xi1>
    %20 = vector.broadcast %cst_10 : f32 to vector<16x128xf32>
    %21 = arith.select %19, %12, %20 : vector<16x128xi1>, vector<16x128xf32>
    %c127_i32 = arith.constant 127 : i32
    %22 = tpu.dynamic_rotate %10 by %c127_i32 dim 1 : vector<16x128xf32>, i32 -> vector<16x128xf32>
    %c0_i32 = arith.constant 0 : i32
    %23 = vector.broadcast %c0_i32 : i32 to vector<1x128xi32>
    %24 = arith.cmpi sge, %5, %23 : vector<1x128xi32>
    %c127_i32_11 = arith.constant 127 : i32
    %25 = vector.broadcast %c127_i32_11 : i32 to vector<1x128xi32>
    %26 = arith.cmpi slt, %5, %25 : vector<1x128xi32>
    %27 = arith.andi %24, %26 : vector<1x128xi1>
    %cst_12 = arith.constant 0.000000e+00 : f32
    %28 = vector.shape_cast %27 : vector<1x128xi1> to vector<1x128xi1>
    %29 = vector.broadcast %28 : vector<1x128xi1> to vector<16x128xi1>
    %30 = vector.broadcast %cst_12 : f32 to vector<16x128xf32>
    %31 = arith.select %29, %22, %30 : vector<16x128xi1>, vector<16x128xf32>
    %32 = tpu.concatenate %21, %10, %31, %4 in 0 : vector<16x128xf32>, vector<16x128xf32>, vector<16x128xf32>, vector<1x128xf32> -> vector<49x128xf32>
    %c0_13 = arith.constant 0 : index
    %c0_14 = arith.constant 0 : index
    %c0_15 = arith.constant 0 : index
    %33 = vector.load %arg5[%c0_13, %c0_14, %c0_15] : memref<2x32x49xf32, #tpu.memory_space<vmem>>, vector<1x32x49xf32>
    %34 = vector.shape_cast %33 : vector<1x32x49xf32> to vector<32x49xf32>
    %cst_16 = arith.constant dense<0.000000e+00> : vector<32x128xf32>
    %35 = tpu.matmul %34, %32, %cst_16 {dimension_numbers = #tpu.dot_dimension_numbers<[1], [0], [0], [1], [0, 0, 1, 1], [], []>} : vector<32x49xf32>, vector<49x128xf32>, vector<32x128xf32> -> vector<32x128xf32>
    %36 = vector.extract_strided_slice %35 {offsets = [0, 0], sizes = [16, 128], strides = [1, 1]} : vector<32x128xf32> to vector<16x128xf32>
    %37 = math.tanh %36 : vector<16x128xf32>
    %38 = vector.extract_strided_slice %35 {offsets = [16, 0], sizes = [16, 128], strides = [1, 1]} : vector<32x128xf32> to vector<16x128xf32>
    %39 = arith.negf %38 : vector<16x128xf32>
    %40 = math.exp %39 : vector<16x128xf32>
    %cst_17 = arith.constant 1.000000e+00 : f32
    %41 = vector.broadcast %cst_17 : f32 to vector<16x128xf32>
    %42 = arith.addf %41, %40 : vector<16x128xf32>
    %43 = arith.divf %41, %42 : vector<16x128xf32>
    %44 = arith.mulf %37, %43 : vector<16x128xf32>
    %45 = tpu.concatenate %44, %4 in 0 : vector<16x128xf32>, vector<1x128xf32> -> vector<17x128xf32>
    %c0_18 = arith.constant 0 : index
    %c0_19 = arith.constant 0 : index
    %c0_20 = arith.constant 0 : index
    %46 = vector.load %arg6[%c0_18, %c0_19, %c0_20] : memref<2x32x17xf32, #tpu.memory_space<vmem>>, vector<1x32x17xf32>
    %47 = vector.shape_cast %46 : vector<1x32x17xf32> to vector<32x17xf32>
    %cst_21 = arith.constant dense<0.000000e+00> : vector<32x128xf32>
    %48 = tpu.matmul %47, %45, %cst_21 {dimension_numbers = #tpu.dot_dimension_numbers<[1], [0], [0], [1], [0, 0, 1, 1], [], []>} : vector<32x17xf32>, vector<17x128xf32>, vector<32x128xf32> -> vector<32x128xf32>
    %49 = vector.extract_strided_slice %48 {offsets = [0, 0], sizes = [16, 128], strides = [1, 1]} : vector<32x128xf32> to vector<16x128xf32>
    %50 = arith.addf %10, %49 : vector<16x128xf32>
    %51 = arith.mulf %50, %3 : vector<16x128xf32>
    %52 = vector.extract_strided_slice %48 {offsets = [16, 0], sizes = [16, 128], strides = [1, 1]} : vector<32x128xf32> to vector<16x128xf32>
    %53 = arith.addf %11, %52 : vector<16x128xf32>
    %c2_i32 = arith.constant 2 : i32
    %54 = tpu.dynamic_rotate %51 by %c2_i32 dim 1 : vector<16x128xf32>, i32 -> vector<16x128xf32>
    %c2_i32_22 = arith.constant 2 : i32
    %55 = vector.broadcast %c2_i32_22 : i32 to vector<1x128xi32>
    %56 = arith.cmpi sge, %5, %55 : vector<1x128xi32>
    %c128_i32_23 = arith.constant 128 : i32
    %57 = vector.broadcast %c128_i32_23 : i32 to vector<1x128xi32>
    %58 = arith.cmpi slt, %5, %57 : vector<1x128xi32>
    %59 = arith.andi %56, %58 : vector<1x128xi1>
    %cst_24 = arith.constant 0.000000e+00 : f32
    %60 = vector.shape_cast %59 : vector<1x128xi1> to vector<1x128xi1>
    %61 = vector.broadcast %60 : vector<1x128xi1> to vector<16x128xi1>
    %62 = vector.broadcast %cst_24 : f32 to vector<16x128xf32>
    %63 = arith.select %61, %54, %62 : vector<16x128xi1>, vector<16x128xf32>
    %c126_i32 = arith.constant 126 : i32
    %64 = tpu.dynamic_rotate %51 by %c126_i32 dim 1 : vector<16x128xf32>, i32 -> vector<16x128xf32>
    %c0_i32_25 = arith.constant 0 : i32
    %65 = vector.broadcast %c0_i32_25 : i32 to vector<1x128xi32>
    %66 = arith.cmpi sge, %5, %65 : vector<1x128xi32>
    %c126_i32_26 = arith.constant 126 : i32
    %67 = vector.broadcast %c126_i32_26 : i32 to vector<1x128xi32>
    %68 = arith.cmpi slt, %5, %67 : vector<1x128xi32>
    %69 = arith.andi %66, %68 : vector<1x128xi1>
    %cst_27 = arith.constant 0.000000e+00 : f32
    %70 = vector.shape_cast %69 : vector<1x128xi1> to vector<1x128xi1>
    %71 = vector.broadcast %70 : vector<1x128xi1> to vector<16x128xi1>
    %72 = vector.broadcast %cst_27 : f32 to vector<16x128xf32>
    %73 = arith.select %71, %64, %72 : vector<16x128xi1>, vector<16x128xf32>
    %74 = tpu.concatenate %63, %51, %73, %4 in 0 : vector<16x128xf32>, vector<16x128xf32>, vector<16x128xf32>, vector<1x128xf32> -> vector<49x128xf32>
    %c1 = arith.constant 1 : index
    %c0_28 = arith.constant 0 : index
    %c0_29 = arith.constant 0 : index
    %75 = vector.load %arg5[%c1, %c0_28, %c0_29] : memref<2x32x49xf32, #tpu.memory_space<vmem>>, vector<1x32x49xf32>
    %76 = vector.shape_cast %75 : vector<1x32x49xf32> to vector<32x49xf32>
    %cst_30 = arith.constant dense<0.000000e+00> : vector<32x128xf32>
    %77 = tpu.matmul %76, %74, %cst_30 {dimension_numbers = #tpu.dot_dimension_numbers<[1], [0], [0], [1], [0, 0, 1, 1], [], []>} : vector<32x49xf32>, vector<49x128xf32>, vector<32x128xf32> -> vector<32x128xf32>
    %78 = vector.extract_strided_slice %77 {offsets = [0, 0], sizes = [16, 128], strides = [1, 1]} : vector<32x128xf32> to vector<16x128xf32>
    %79 = math.tanh %78 : vector<16x128xf32>
    %80 = vector.extract_strided_slice %77 {offsets = [16, 0], sizes = [16, 128], strides = [1, 1]} : vector<32x128xf32> to vector<16x128xf32>
    %81 = arith.negf %80 : vector<16x128xf32>
    %82 = math.exp %81 : vector<16x128xf32>
    %cst_31 = arith.constant 1.000000e+00 : f32
    %83 = vector.broadcast %cst_31 : f32 to vector<16x128xf32>
    %84 = arith.addf %83, %82 : vector<16x128xf32>
    %85 = arith.divf %83, %84 : vector<16x128xf32>
    %86 = arith.mulf %79, %85 : vector<16x128xf32>
    %87 = tpu.concatenate %86, %4 in 0 : vector<16x128xf32>, vector<1x128xf32> -> vector<17x128xf32>
    %c1_32 = arith.constant 1 : index
    %c0_33 = arith.constant 0 : index
    %c0_34 = arith.constant 0 : index
    %88 = vector.load %arg6[%c1_32, %c0_33, %c0_34] : memref<2x32x17xf32, #tpu.memory_space<vmem>>, vector<1x32x17xf32>
    %89 = vector.shape_cast %88 : vector<1x32x17xf32> to vector<32x17xf32>
    %cst_35 = arith.constant dense<0.000000e+00> : vector<32x128xf32>
    %90 = tpu.matmul %89, %87, %cst_35 {dimension_numbers = #tpu.dot_dimension_numbers<[1], [0], [0], [1], [0, 0, 1, 1], [], []>} : vector<32x17xf32>, vector<17x128xf32>, vector<32x128xf32> -> vector<32x128xf32>
    %91 = vector.extract_strided_slice %90 {offsets = [16, 0], sizes = [16, 128], strides = [1, 1]} : vector<32x128xf32> to vector<16x128xf32>
    %92 = arith.addf %53, %91 : vector<16x128xf32>
    %93 = arith.mulf %92, %3 : vector<16x128xf32>
    %94 = tpu.concatenate %93, %4 in 0 : vector<16x128xf32>, vector<1x128xf32> -> vector<17x128xf32>
    %c0_36 = arith.constant 0 : index
    %c0_37 = arith.constant 0 : index
    %95 = vector.load %arg7[%c0_36, %c0_37] : memref<4x17xf32, #tpu.memory_space<vmem>>, vector<4x17xf32>
    %cst_38 = arith.constant dense<0.000000e+00> : vector<4x128xf32>
    %96 = tpu.matmul %95, %94, %cst_38 {dimension_numbers = #tpu.dot_dimension_numbers<[1], [0], [0], [1], [0, 0, 1, 1], [], []>} : vector<4x17xf32>, vector<17x128xf32>, vector<4x128xf32> -> vector<4x128xf32>
    %97 = vector.broadcast %1 : vector<1x128xf32> to vector<4x128xf32>
    %98 = arith.mulf %96, %97 : vector<4x128xf32>
    %c0_39 = arith.constant 0 : index
    %c0_40 = arith.constant 0 : index
    %99 = vector.load %arg8[%c0_39, %c0_40] : memref<4x17xf32, #tpu.memory_space<vmem>>, vector<4x17xf32>
    %cst_41 = arith.constant dense<0.000000e+00> : vector<4x128xf32>
    %100 = tpu.matmul %99, %94, %cst_41 {dimension_numbers = #tpu.dot_dimension_numbers<[1], [0], [0], [1], [0, 0, 1, 1], [], []>} : vector<4x17xf32>, vector<17x128xf32>, vector<4x128xf32> -> vector<4x128xf32>
    %101 = vector.broadcast %1 : vector<1x128xf32> to vector<4x128xf32>
    %102 = arith.mulf %100, %101 : vector<4x128xf32>
    %c0_42 = arith.constant 0 : index
    %c0_43 = arith.constant 0 : index
    %c0_44 = arith.constant 0 : index
    %103 = vector.load %arg3[%c0_42, %c0_43, %c0_44] : memref<1x4x128xf32, #tpu.memory_space<vmem>>, vector<1x4x128xf32>
    %104 = vector.shape_cast %103 : vector<1x4x128xf32> to vector<4x128xf32>
    %105 = math.exp %102 : vector<4x128xf32>
    %106 = arith.mulf %104, %105 : vector<4x128xf32>
    %107 = arith.addf %98, %106 : vector<4x128xf32>
    %108 = vector.broadcast %1 : vector<1x128xf32> to vector<4x128xf32>
    %109 = arith.mulf %107, %108 : vector<4x128xf32>
    %c0_45 = arith.constant 0 : index
    %c0_46 = arith.constant 0 : index
    %c0_47 = arith.constant 0 : index
    %110 = vector.load %arg9[%c0_45, %c0_46, %c0_47] : memref<1x4x128xf32, #tpu.memory_space<vmem>>, vector<1x4x128xf32>
    %111 = vector.shape_cast %110 : vector<1x4x128xf32> to vector<4x128xf32>
    %112 = vector.shape_cast %109 : vector<4x128xf32> to vector<1x4x128xf32>
    tpu.vector_store %arg9[%c0_45, %c0_46, %c0_47], %112 {strides = array<i32>} : memref<1x4x128xf32, #tpu.memory_space<vmem>>, vector<1x4x128xf32>,
    %c0_48 = arith.constant 0 : index
    %c0_49 = arith.constant 0 : index
    %c0_50 = arith.constant 0 : index
    %113 = vector.load %arg10[%c0_48, %c0_49, %c0_50] : memref<1x4x128xf32, #tpu.memory_space<vmem>>, vector<1x4x128xf32>
    %114 = vector.shape_cast %113 : vector<1x4x128xf32> to vector<4x128xf32>
    %115 = vector.shape_cast %98 : vector<4x128xf32> to vector<1x4x128xf32>
    tpu.vector_store %arg10[%c0_48, %c0_49, %c0_50], %115 {strides = array<i32>} : memref<1x4x128xf32, #tpu.memory_space<vmem>>, vector<1x4x128xf32>,
    %c0_51 = arith.constant 0 : index
    %c0_52 = arith.constant 0 : index
    %c0_53 = arith.constant 0 : index
    %116 = vector.load %arg11[%c0_51, %c0_52, %c0_53] : memref<1x4x128xf32, #tpu.memory_space<vmem>>, vector<1x4x128xf32>
    %117 = vector.shape_cast %116 : vector<1x4x128xf32> to vector<4x128xf32>
    %118 = vector.shape_cast %102 : vector<4x128xf32> to vector<1x4x128xf32>
    tpu.vector_store %arg11[%c0_51, %c0_52, %c0_53], %118 {strides = array<i32>} : memref<1x4x128xf32, #tpu.memory_space<vmem>>, vector<1x4x128xf32>,
    return
  }
  func.func @transform_0(%arg0: i32) -> (i32, i32, i32) {
    %c0_i32 = arith.constant 0 : i32
    %c0_i32_0 = arith.constant 0 : i32
    %c0_i32_1 = arith.constant 0 : i32
    return %arg0, %c0_i32, %c0_i32_0 : i32, i32, i32
  }
  func.func @transform_1(%arg0: i32) -> (i32, i32, i32) {
    %c0_i32 = arith.constant 0 : i32
    %c0_i32_0 = arith.constant 0 : i32
    %c0_i32_1 = arith.constant 0 : i32
    return %arg0, %c0_i32, %c0_i32_0 : i32, i32, i32
  }
  func.func @transform_2(%arg0: i32) -> (i32, i32, i32) {
    %c0_i32 = arith.constant 0 : i32
    %c0_i32_0 = arith.constant 0 : i32
    %c0_i32_1 = arith.constant 0 : i32
    return %arg0, %c0_i32, %c0_i32_0 : i32, i32, i32
  }
  func.func @transform_3(%arg0: i32) -> (i32, i32) {
    %c0_i32 = arith.constant 0 : i32
    %c0_i32_0 = arith.constant 0 : i32
    %c0_i32_1 = arith.constant 0 : i32
    return %c0_i32, %c0_i32_0 : i32, i32
  }
  func.func @transform_4(%arg0: i32) -> (i32, i32, i32) {
    %c0_i32 = arith.constant 0 : i32
    %c0_i32_0 = arith.constant 0 : i32
    %c0_i32_1 = arith.constant 0 : i32
    %c0_i32_2 = arith.constant 0 : i32
    return %c0_i32, %c0_i32_0, %c0_i32_1 : i32, i32, i32
  }
  func.func @transform_5(%arg0: i32) -> (i32, i32, i32) {
    %c0_i32 = arith.constant 0 : i32
    %c0_i32_0 = arith.constant 0 : i32
    %c0_i32_1 = arith.constant 0 : i32
    %c0_i32_2 = arith.constant 0 : i32
    return %c0_i32, %c0_i32_0, %c0_i32_1 : i32, i32, i32
  }
  func.func @transform_6(%arg0: i32) -> (i32, i32) {
    %c0_i32 = arith.constant 0 : i32
    %c0_i32_0 = arith.constant 0 : i32
    %c0_i32_1 = arith.constant 0 : i32
    return %c0_i32, %c0_i32_0 : i32, i32
  }
  func.func @transform_7(%arg0: i32) -> (i32, i32) {
    %c0_i32 = arith.constant 0 : i32
    %c0_i32_0 = arith.constant 0 : i32
    %c0_i32_1 = arith.constant 0 : i32
    return %c0_i32, %c0_i32_0 : i32, i32
  }
  func.func @transform_8(%arg0: i32) -> (i32, i32, i32) {
    %c0_i32 = arith.constant 0 : i32
    %c0_i32_0 = arith.constant 0 : i32
    %c0_i32_1 = arith.constant 0 : i32
    return %arg0, %c0_i32, %c0_i32_0 : i32, i32, i32
  }
  func.func @transform_9(%arg0: i32) -> (i32, i32, i32) {
    %c0_i32 = arith.constant 0 : i32
    %c0_i32_0 = arith.constant 0 : i32
    %c0_i32_1 = arith.constant 0 : i32
    return %arg0, %c0_i32, %c0_i32_0 : i32, i32, i32
  }
  func.func @transform_10(%arg0: i32) -> (i32, i32, i32) {
    %c0_i32 = arith.constant 0 : i32
    %c0_i32_0 = arith.constant 0 : i32
    %c0_i32_1 = arith.constant 0 : i32
    return %arg0, %c0_i32, %c0_i32_0 : i32, i32, i32
  }
}

</mosaic_0001>

<bundles_post_ra>
// kernel: tpu_custom_call.1
= control target key start
LH: loop header
LB: loop body
LE: loop exit
PB: predicated region body
PF: predicated region fallthrough
CT: control target
= control target key end

     0   :  { %s2130_s0 = inlined_call_operand.vmem [shape: f32[2,9,128], index: 0, kind: input, shape index: {}]   ;;  %s2131_s1 = inlined_call_operand.vmem [shape: f32[2,1,128], index: 1, kind: input, shape index: {}]   ;;  %s2132_s2 = inlined_call_operand.vmem [shape: f32[2,4,128], index: 2, kind: input, shape index: {}]   ;;  %s2133_s3 = inlined_call_operand.vmem [shape: f32[16,9], index: 3, kind: input, shape index: {}]   ;;  %s2134_s4 = inlined_call_operand.vmem [shape: f32[2,32,49], index: 4, kind: input, shape index: {}]   ;;  %s2135_s5 = inlined_call_operand.vmem [shape: f32[2,32,17], index: 5, kind: input, shape index: {}]   ;;  %s2136_s6 = inlined_call_operand.vmem [shape: f32[4,17], index: 6, kind: input, shape index: {}]   ;;  %s2137_s7 = inlined_call_operand.vmem [shape: f32[4,17], index: 7, kind: input, shape index: {}]   ;;  %s2138_s8 = inlined_call_operand.hbm [shape: f32[2,4,128], index: 8, kind: output, shape index: {0}]   ;;  %s2139_s9 = inlined_call_operand.hbm [shape: f32[2,4,128], index: 9, kind: output, shape index: {1}]   ;;  %s2140_s10 = inlined_call_operand.hbm [shape: f32[2,4,128], index: 10, kind: output, shape index: {2}]  }
   0x1   :  { %2143 = sst [smem:[#allocation9_spill]] %s2130_s0 }
   0x2   :  { %2144 = sst [smem:[#allocation10_spill]] %s2131_s1 }
   0x3   :  { %2145 = sst [smem:[#allocation11_spill]] %s2133_s3 }
   0x4   :  { %2146 = sst [smem:[#allocation12_spill]] %s2134_s4 }
   0x5   :  { %2147 = sst [smem:[#allocation13_spill]] %s2135_s5 }
   0x6   :  { %16 = vsyncpa [#allocation3], 0 }
   0x7   :  { %18 = vsyncpa [#allocation3 + $0x1], 0 }
   0x8   :  { %19 = vsyncpa [#allocation5], 0 }
   0x9   :  { %21 = vsyncpa [#allocation5 + $0x1], 0  ;;  %s1820_s13 = smov 0   ;;  %s1822_s14 = smov 0  }
   0xa   :  { %s1824_s15 = smov 0   ;;  %s1826_s16 = smov 0  }
   0xb LB: > { %s1841_s17 = sadd.s32 4294967295, %s1753_s16   ;;  %s2141_s18 = sadd.s32 4294967294, %s1753_s16   ;;  %s1753_s16 = sphi %s1826_s16, %s2160_s16   ;;  %s1749_s15 = sphi %s1824_s15, %s2159_s15   ;;  %s1745_s14 = sphi %s1822_s14, %s2158_s14   ;;  %s1741_s13 = sphi %s1820_s13, %s2157_s13  }
   0xc   : > { %s1845_s19 = sadd.s32 1, %s1753_s16   ;;  %s217_s20 = sadd.s32 1, %s1749_s15 }
   0xd   : > { %s214_s21 = ssub.s32 %s1753_s16, %s1845_s19  ;;  %p227_p0 = scmp.ne.s32.totalorder %s1749_s15, %s1745_s14 }
   0xe   : > { %p215_p1 = scmp.eq.s32.totalorder %s214_s21, 0  ;;  %p228_p2 = scmp.eq.s32.totalorder %s1841_s17, 1 }
   0xf   : > { %p233_p3 = scmp.ne.s32.totalorder %s1745_s14, %s1741_s13  ;;  %p234_p4 = scmp.eq.s32.totalorder %s2141_s18, 1 }
  0x10   : > { %s1858_s22 = scalar_select %p215_p1, %s1749_s15, %s217_s20  }
  0x11   : > { %p1860_p5 = por %p228_p2, %p227_p0  ;;  %p1864_p6 = por %p234_p4, %p233_p3 }
  0x12   : > { %p1354_p7 = scmp.ge.s32.totalorder %s1753_s16, 1  ;;  %p340_p8 = scmp.lt.s32.totalorder %s1753_s16, 3 }
  0x14   : > { %p341_p9 = pnand %p1354_p7, %p340_p8 }
  0x15   : > { %p395_p10 = scmp.lt.s32.totalorder (!%p341_p9), %s1841_s17, 1  ;;  %s2150_s3 = sld [smem:[#allocation11_spill]] (!%p341_p9) }
  0x16   : > { %344 = sbr.rel (%p341_p9) target bundleno = 1612 (0x64c), region = 52  ;;  %s2151_s0 = sld [smem:[#allocation9_spill]] (!%p341_p9) }
  0x17   : > { %s2152_s1 = sld [smem:[#allocation10_spill]] (!%p341_p9)  ;;  %s1756_s30 = smov (!%p341_p9), 1  }
  0x18   : > { %s2153_s4 = sld [smem:[#allocation12_spill]] (!%p341_p9)  ;;  %s2142_s12 = sand.u32 (!%p341_p9), 1, %s1745_s14  }
  0x19   : > { %s2154_s5 = sld [smem:[#allocation13_spill]] (!%p341_p9)  ;;  %s2013_s20 = sshll.u32 (!%p341_p9), %s2142_s12, 2 }
  0x1a   : > { %s1165_s21 = sand.u32 (!%p341_p9), 1, %s1841_s17   ;;  %s2017_s25 = sshll.u32 (!%p341_p9), %s1841_s17, 6 }
  0x1b   : > { %v416_v0 = vld [vmem:[%s2150_s3] sm:$0xff]  ;;  %vm420_vm0 = vcmask 72704   ;;  %s1875_s27 = scalar_select %p395_p10, %s1841_s17, 1  ;;  %vm427_vm1 = vcmask 1040384   ;;  %v417_v3 = vld [vmem:[%s2150_s3 + $0x8] sm:$0xff]  ;;  %v1755_v4 = vmov 1.0   ;;  %v414_v11 = vlaneseq }
  0x1c   : > { %1470 = vmatprep.mubr.msk.f32.mxu0 %vm420_vm0, %v416_v0  ;;  %1473 = vmatprep.subr.msk.mxu1 %vm427_vm1, %v1755_v4  ;;  %vm534_vm2 = vcmask 400384   ;;  %vm655_vm5 = vcmask 138240   ;;  %vm1761_vm8 = vmmov 0   ;;  %s394_s29 = scalar_lea.vmem [#allocation6], %s2013_s20  ;;  %s2029_s12 = scalar_lea.hbm %s2139_s9, %s2017_s25 }
  0x1d   : > { %s1417_s28 = sshll.u32 %s1875_s27, 4  ;;  %1474 = vmatpush3.msk.msra.mxu1 %vm427_vm1, %v1755_v4  ;;  %s402_s26 = scalar_lea.vmem %s2152_s1, %s1875_s27  ;;  %v1914_v12 = vand.u32 127, %v414_v11 }
  0x1e   : > { %s399_s11 = scalar_lea.vmem %s2151_s0, %s1417_s28  ;;  %v1898_v5 = vld [vmem:[%s402_s26] ss:$0 sm:$0xff]  ;;  %v531_v17 = vld [vmem:[%s2153_s4 + $0x8] sm:$0xff]  ;;  %v532_v18 = vld [vmem:[%s2153_s4 + $0x10] sm:$0xff]  ;;  %s387_s26 = scalar_lea.vmem [#allocation4], %s2013_s20 }
  0x1f   : > { %v419_v1 = vld [vmem:[%s399_s11 + $0x8] sm:$0x1]  ;;  %v418_v2 = vld [vmem:[%s399_s11] sm:$0xff]  ;;  %s1757_s11 = smov 127   ;;  %vm524_vm3 = vcmp.lt.s32.totalorder %v1914_v12, 127  ;;  %vm512_vm4 = vcmp.ge.s32.totalorder %v1914_v12, 1  ;;  %s2039_s1 = scalar_lea.hbm %s2140_s10, %s2017_s25 }
  0x20   : > { %1466 = vmatprep.subr.msk.mxu0 %vm427_vm1, %v419_v1  ;;  %v530_v9 = vld [vmem:[%s2153_s4] sm:$0xff]  ;;  %v533_v19 = vld [vmem:[%s2153_s4 + $0x18] sm:$0xff]  ;;  %v652_v37 = vld [vmem:[%s2154_s5 + $0x8] sm:$0xff]  ;;  %vm773_vm6 = vcmp.lt.s32.totalorder %v1914_v12, 126  ;;  %vm763_vm7 = vcmp.ge.s32.totalorder %v1914_v12, 2  ;;  %s1197_s28 = sshll.u32 %s387_s26, 4  ;;  %s2031_s28 = int_to_ptr.vmem [resolvable:$true] %s1197_s28 }
  0x21   : > { %1467 = vmatpush3.msk.msra.mxu0 %vm427_vm1, %v419_v1  ;;  %1487 = vmatprep.mubr.msk.f32.mxu1 %vm534_vm2, %v530_v9  ;;  %v651_v20 = vld [vmem:[%s2154_s5] sm:$0xff]  ;;  %v653_v38 = vld [vmem:[%s2154_s5 + $0x10] sm:$0xff]  ;;  %v654_v39 = vld [vmem:[%s2154_s5 + $0x18] sm:$0xff]  ;;  %s2042_s18 = scalar_lea.sflag [#allocation5], %s1165_s21  ;;  %s1762_s3 = smov [#allocation4]  }
  0x22   : > { %1468 = vmatprep.subr.mxu0 %v418_v2  ;;  %v1381_v43 = vld [vmem:[%s2153_s4 + $0x20] sm:$0xff]  ;;  %v1382_v51 = vld [vmem:[%s2153_s4 + $0x28] sm:$0xff]  ;;  %v1383_v52 = vld [vmem:[%s2153_s4 + $0x30] sm:$0xff] }
  0x23   : > { %1469 = vmatpush3.msra.mxu0 %v418_v2  ;;  %v1384_v53 = vld [vmem:[%s2153_s4 + $0x38] sm:$0xff]  ;;  %v1396_v54 = vld [vmem:[%s2154_s5 + $0x20] sm:$0xff]  ;;  %v1397_v11 = vld [vmem:[%s2154_s5 + $0x28] sm:$0xff]  ;;  %s1641_s4 = sshll.u32 %s1762_s3, 4  ;;  %s1642_s4 = int_to_ptr.vmem [resolvable:$false] %s1641_s4 }
  0x24   : > { %1471 = vmatmul.mubr.msk.f32.vlgmr.msra.gmra.mxu0 %vm420_vm0, %v417_v3  ;;  %1493 = vmatprep.subr.msk.mxu0 %vm427_vm1, %v1755_v4  ;;  %v1398_v12 = vld [vmem:[%s2154_s5 + $0x30] sm:$0xff]  ;;  %p1644_p0 = scmp.lt.s32.totalorder %s2031_s28, %s1642_s4 }
  0x25   : > { %1494 = vmatpush3.msk.msra.mxu0 %vm427_vm1, %v1755_v4  ;;  %1499 = vmatprep.mubr.msk.f32.mxu0 %vm655_vm5, %v651_v20 }
  0xe4   : > { %v1472_v6 = vpop.f32.mrf.mxu0 }
  0xe5   : > { %v1901_v7 = vmul.f32 %v1472_v6, %v1898_v5 }
  0xe6   : > { %v497_v8 = vpop.f32.mrf.mxu0 }
  0xe7   : > { %510 = vrot.lane.b32.xlu1 %v1901_v7, %s1756_s30  ;;  %521 = vrot.lane.b32.xlu0 %v1901_v7, %s1757_s11  ;;  %v1910_v10 = vmul.f32 %v1898_v5, %v497_v8 }
  0xeb   : > { %508 = vrot.lane.b32.xlu1 %v1910_v10, %s1756_s30  ;;  %519 = vrot.lane.b32.xlu0 %v1910_v10, %s1757_s11  ;;  %s1758_s30 = smov 126   ;;  %s1759_s11 = smov 2  }
 0x159   : > { %v522_v13 = vpop.permute.xlu0 %521  ;;  %v511_v15 = vpop.permute.xlu1 %510 }
 0x15a   : > { %1475 = vmatprep.subr.msk.mxu1 %vm524_vm3, %v522_v13 }
 0x15b   : > { %1476 = vmatpush3.msk.msra.mxu1 %vm524_vm3, %v522_v13  ;;  %v1399_v13 = vld [vmem:[%s2154_s5 + $0x38] sm:$0xff]  ;;  %s1643_s5 = scalar_lea.vmem %s1642_s4, 128 }
 0x15d   : > { %v520_v14 = vpop.permute.xlu0 %519  ;;  %v509_v16 = vpop.permute.xlu1 %508 }
 0x15e   : > { %1477 = vmatprep.subr.msk.mxu1 %vm524_vm3, %v520_v14 }
 0x15f   : > { %1478 = vmatpush3.msk.msra.mxu1 %vm524_vm3, %v520_v14  ;;  %v1760_v14 = vmov 0.0  }
 0x160   : > { %1479 = vmatprep.subr.mxu1 %v1901_v7 }
 0x161   : > { %1480 = vmatpush3.msra.mxu1 %v1901_v7 }
 0x162   : > { %1481 = vmatprep.subr.mxu1 %v1910_v10 }
 0x163   : > { %1482 = vmatpush3.msra.mxu1 %v1910_v10 }
 0x164   : > { %1483 = vmatprep.subr.msk.mxu1 %vm512_vm4, %v511_v15 }
 0x165   : > { %1484 = vmatpush3.msk.msra.mxu1 %vm512_vm4, %v511_v15 }
 0x166   : > { %1485 = vmatprep.subr.msk.mxu1 %vm512_vm4, %v509_v16 }
 0x167   : > { %1486 = vmatpush3.msk.msra.mxu1 %vm512_vm4, %v509_v16 }
 0x168   : > { %1488 = vmatmul.mubr.msk.f32.vlgmr.msra.gmra.mxu1 %vm534_vm2, %v531_v17  ;;  %1525 = vmatprep.subr.msk.mxu1 %vm427_vm1, %v1755_v4 }
 0x169   : > { %1490 = vmatprep.mubr.msk.f32.mxu1 %vm534_vm2, %v532_v18  ;;  %1526 = vmatpush3.msk.msra.mxu1 %vm427_vm1, %v1755_v4 }
 0x16c   : > { %1491 = vmatmul.mubr.msk.f32.gmra.mxu1 %vm534_vm2, %v533_v19 }
 0x16d   : > { %1531 = vmatprep.mubr.msk.f32.mxu1 %vm655_vm5, %v1396_v54 }
 0x228   : > { %v1489_v21 = vpop.f32.mrf.mxu1 }
 0x22a   : > { %v616_v22 = vpop.f32.mrf.mxu1 }
 0x22c   : > { %v1492_v23 = vpop.f32.mrf.mxu1 }
 0x22d   : > { %v1375_v24 = vmul.f32 -1.442695, %v1492_v23  ;;  %v1001_v23 = vld [vmem:[%s2136_s6] sm:$0xf] }
 0x22e   : > { %v626_v25 = vpop.f32.mrf.mxu1 }
 0x22f   : > { %1611 = vpow2.f32 %v1375_v24  ;;  %v1374_v26 = vmul.f32 -1.442695, %v626_v25 }
 0x231   : > { %1613 = vpow2.f32 %v1374_v26 }
 0x232   : > { %1615 = vtanh.f32 %v1489_v21 }
 0x23c   : > { %v1612_v27 = vpop.eup %1611 }
 0x23d   : > { %v644_v28 = vadd.f32 1.0, %v1612_v27 }
 0x23e   : > { %v1614_v29 = vpop.eup %1613 }
 0x23f   : > { %1617 = vrcp.f32 %v644_v28  ;;  %v643_v30 = vadd.f32 1.0, %v1614_v29  ;;  %v1616_v31 = vpop.eup %1615 }
 0x240   : > { %1619 = vtanh.f32 %v616_v22 }
 0x241   : > { %1621 = vrcp.f32 %v643_v30 }
 0x24c   : > { %v1618_v32 = vpop.eup %1617 }
 0x24d   : > { %v1620_v33 = vpop.eup %1619  ;;  %v650_v34 = vmul.f32 %v1618_v32, %v1616_v31 }
 0x24e   : > { %v1622_v35 = vpop.eup %1621 }
 0x24f   : > { %1495 = vmatprep.subr.mxu0 %v650_v34  ;;  %v649_v36 = vmul.f32 %v1622_v35, %v1620_v33 }
 0x250   : > { %1496 = vmatpush3.msra.mxu0 %v650_v34 }
 0x251   : > { %1497 = vmatprep.subr.mxu0 %v649_v36 }
 0x252   : > { %1498 = vmatpush3.msra.mxu0 %v649_v36 }
 0x253   : > { %1500 = vmatmul.mubr.msk.f32.vlgmr.msra.gmra.mxu0 %vm655_vm5, %v652_v37  ;;  %1505 = vmatprep.subr.msk.mxu0 %vm427_vm1, %v1755_v4 }
 0x254   : > { %1506 = vmatpush3.msk.msra.mxu0 %vm427_vm1, %v1755_v4  ;;  %1502 = vmatprep.mubr.msk.f32.mxu0 %vm655_vm5, %v653_v38 }
 0x257   : > { %1503 = vmatmul.mubr.msk.f32.gmra.mxu0 %vm655_vm5, %v654_v39 }
 0x258   : > { %1519 = vmatprep.mubr.msk.f32.mxu0 %vm534_vm2, %v1381_v43 }
 0x313   : > { %v1501_v40 = vpop.f32.mrf.mxu0 }
 0x314   : > { %v754_v41 = vadd.f32 %v1501_v40, %v1901_v7 }
 0x315   : > { %v734_v42 = vpop.f32.mrf.mxu0 }
 0x316   : > { %v756_v44 = vmul.f32 %v1898_v5, %v754_v41  ;;  %v753_v45 = vadd.f32 %v734_v42, %v1910_v10 }
 0x317   : > { %v1504_v55 = vpop.f32.mrf.mxu0 }
 0x318   : > { %v755_v46 = vmul.f32 %v1898_v5, %v753_v45  ;;  %771 = vrot.lane.b32.xlu0 %v756_v44, %s1758_s30 }
 0x319   : > { %v744_v56 = vpop.f32.mrf.mxu0 }
 0x31a   : > { %769 = vrot.lane.b32.xlu1 %v755_v46, %s1758_s30  ;;  %s1210_s30 = sshll.u32 %s394_s29, 4  ;;  %s2033_s30 = int_to_ptr.vmem [resolvable:$true] %s1210_s30 }
 0x31c   : > { %761 = vrot.lane.b32.xlu0 %v756_v44, %s1759_s11 }
 0x31e   : > { %759 = vrot.lane.b32.xlu1 %v755_v46, %s1759_s11  ;;  %s1637_s11 = scalar_lea.vmem %s2031_s28, 64 }
 0x31f   : > { %p1638_p11 = scmp.ne.s32.totalorder %s2031_s28, %s1637_s11  ;;  %p1645_p1 = scmp.lt.s32.totalorder %s1643_s5, %s1637_s11 }
 0x321   : > { %p1639_p12 = pnand %p1638_p11, %p1860_p5  ;;  %p1646_p2 = por %p1645_p1, %p1644_p0 }
 0x323   : > { %p1640_p13 = pneg %p1639_p12 }
 0x325   : > { %p1647_p3 = pnand %p1646_p2, %p1640_p13 }
 0x38a   : > { %v772_v47 = vpop.permute.xlu0 %771 }
 0x38b   : > { %1507 = vmatprep.subr.msk.mxu0 %vm773_vm6, %v772_v47 }
 0x38c   : > { %1508 = vmatpush3.msk.msra.mxu0 %vm773_vm6, %v772_v47  ;;  %v770_v48 = vpop.permute.xlu1 %769 }
 0x38d   : > { %1509 = vmatprep.subr.msk.mxu0 %vm773_vm6, %v770_v48 }
 0x38e   : > { %1510 = vmatpush3.msk.msra.mxu0 %vm773_vm6, %v770_v48  ;;  %v762_v49 = vpop.permute.xlu0 %761 }
 0x38f   : > { %1511 = vmatprep.subr.mxu0 %v756_v44 }
 0x390   : > { %1512 = vmatpush3.msra.mxu0 %v756_v44  ;;  %v760_v50 = vpop.permute.xlu1 %759 }
 0x391   : > { %1513 = vmatprep.subr.mxu0 %v755_v46 }
 0x392   : > { %1514 = vmatpush3.msra.mxu0 %v755_v46 }
 0x393   : > { %1515 = vmatprep.subr.msk.mxu0 %vm763_vm7, %v762_v49 }
 0x394   : > { %1516 = vmatpush3.msk.msra.mxu0 %vm763_vm7, %v762_v49 }
 0x395   : > { %1517 = vmatprep.subr.msk.mxu0 %vm763_vm7, %v760_v50 }
 0x396   : > { %1518 = vmatpush3.msk.msra.mxu0 %vm763_vm7, %v760_v50 }
 0x397   : > { %1520 = vmatmul.mubr.msk.f32.vlgmr.msra.gmra.mxu0 %vm534_vm2, %v1382_v51  ;;  %1546 = vmatprep.subr.mxu0 %v1760_v14 }
 0x398   : > { %1522 = vmatprep.mubr.msk.f32.mxu0 %vm534_vm2, %v1383_v52  ;;  %1547 = vmatpush3.msk.msra.mxu0 %vm427_vm1, %v1755_v4 }
 0x399   : > { %1548 = vmatprep.subr.mxu0 %v1760_v14 }
 0x39b   : > { %1523 = vmatmul.mubr.msk.f32.gmra.mxu0 %vm534_vm2, %v1384_v53 }
 0x39c   : > { %1552 = vmatprep.mubr.msk.f32.mxu0 %vm1761_vm8, %v1760_v14 }
 0x457   : > { %v1521_v57 = vpop.f32.mrf.mxu0 }
 0x459   : > { %v862_v58 = vpop.f32.mrf.mxu0 }
 0x45b   : > { %v1524_v59 = vpop.f32.mrf.mxu0 }
 0x45c   : > { %v1395_v60 = vmul.f32 -1.442695, %v1524_v59 }
 0x45d   : > { %v872_v61 = vpop.f32.mrf.mxu0 }
 0x45e   : > { %1623 = vpow2.f32 %v1395_v60  ;;  %v1394_v62 = vmul.f32 -1.442695, %v872_v61 }
 0x460   : > { %1625 = vpow2.f32 %v1394_v62 }
 0x461   : > { %1627 = vtanh.f32 %v1521_v57 }
 0x46b   : > { %v1624_v63 = vpop.eup %1623 }
 0x46c   : > { %v890_v0 = vadd.f32 1.0, %v1624_v63 }
 0x46d   : > { %v1626_v1 = vpop.eup %1625 }
 0x46e   : > { %1629 = vrcp.f32 %v890_v0  ;;  %v889_v2 = vadd.f32 1.0, %v1626_v1  ;;  %v1628_v3 = vpop.eup %1627 }
 0x46f   : > { %1631 = vtanh.f32 %v862_v58 }
 0x470   : > { %1633 = vrcp.f32 %v889_v2 }
 0x47b   : > { %v1630_v6 = vpop.eup %1629 }
 0x47c   : > { %v1632_v7 = vpop.eup %1631  ;;  %v896_v8 = vmul.f32 %v1630_v6, %v1628_v3 }
 0x47d   : > { %v1634_v9 = vpop.eup %1633 }
 0x47e   : > { %1527 = vmatprep.subr.mxu1 %v896_v8  ;;  %v895_v10 = vmul.f32 %v1634_v9, %v1632_v7 }
 0x47f   : > { %1528 = vmatpush3.msra.mxu1 %v896_v8 }
 0x480   : > { %1529 = vmatprep.subr.mxu1 %v895_v10 }
 0x481   : > { %1530 = vmatpush3.msra.mxu1 %v895_v10 }
 0x482   : > { %1532 = vmatmul.mubr.msk.f32.vlgmr.msra.gmra.mxu1 %vm655_vm5, %v1397_v11  ;;  %1537 = vmatprep.subr.mxu1 %v1760_v14 }
 0x483   : > { %1534 = vmatprep.mubr.msk.f32.mxu1 %vm655_vm5, %v1398_v12  ;;  %1538 = vmatpush3.msk.msra.mxu1 %vm427_vm1, %v1755_v4  ;;  %v1076_v4 = vld [vmem:[%s2137_s7] sm:$0xf] }
 0x484   : > { %1539 = vmatprep.subr.mxu1 %v1760_v14 }
 0x486   : > { %1535 = vmatmul.mubr.msk.f32.gmra.mxu1 %vm655_vm5, %v1399_v13 }
 0x487   : > { %1543 = vmatprep.mubr.msk.f32.mxu1 %vm1761_vm8, %v1760_v14 }
 0x542   : > { %v1533_v15 = vpop.f32.mrf.mxu1 }
 0x544   : > { %v980_v16 = vpop.f32.mrf.mxu1 }
 0x546   : > { %v1536_v17 = vpop.f32.mrf.mxu1 }
 0x547   : > { %v998_v18 = vadd.f32 %v1536_v17, %v1504_v55 }
 0x548   : > { %v988_v19 = vpop.f32.mrf.mxu1 }
 0x549   : > { %v1000_v20 = vmul.f32 %v1898_v5, %v998_v18  ;;  %v997_v21 = vadd.f32 %v988_v19, %v744_v56 }
 0x54b   : > { %v999_v22 = vmul.f32 %v1898_v5, %v997_v21  ;;  %1540 = vmatpush3.msra.mxu1 %v1000_v20  ;;  %1549 = vmatpush3.msra.mxu0 %v1000_v20 }
 0x54c   : > { %1541 = vmatprep.subr.mxu1 %v1760_v14  ;;  %1550 = vmatprep.subr.mxu0 %v1760_v14 }
 0x54d   : > { %1542 = vmatpush3.msra.mxu1 %v999_v22  ;;  %1551 = vmatpush3.msra.mxu0 %v999_v22 }
 0x54e   : > { %1553 = vmatmul.mubr.msk.f32.vlgmr.msra.gmra.mxu0 %vm655_vm5, %v1076_v4  ;;  %1544 = vmatmul.mubr.msk.f32.vlgmr.msra.gmra.mxu1 %vm655_vm5, %v1001_v23 }
 0x60e   : > { %v1146_v24 = vpop.f32.mrf.mxu0  ;;  %v1071_v25 = vpop.f32.mrf.mxu1 }
 0x60f   : > { %v1150_v26 = vmul.f32 %v1898_v5, %v1146_v24  ;;  %v2023_v27 = vmul.f32 %v1898_v5, %v1071_v25 }
 0x610   : > { %v1554_v28 = vpop.f32.mrf.mxu0  ;;  %v1545_v29 = vpop.f32.mrf.mxu1 }
 0x611   : > { %v1152_v30 = vmul.f32 1.442695, %v1150_v26  ;;  %1159 = vst [vmem:[%s394_s29] sm:$0xf] %v1150_v26  ;;  %1158 = vst [vmem:[%s387_s26] sm:$0xf] %v2023_v27 }
 0x612   : > { %1650 = shalt.err (!%p1647_p3)
}
 0x613   : > { %s1651_s0 = scalar_lea.hbm %s2029_s12, 64  ;;  %s1655_s3 = scalar_lea.hbm %s2139_s9, 128 }
 0x614   : > { %p1652_p4 = scmp.ne.s32.totalorder %s2029_s12, %s1651_s0  ;;  %p1656_p9 = scmp.lt.s32.totalorder %s2029_s12, %s2139_s9 }
 0x615   : > { %p1657_p10 = scmp.lt.s32.totalorder %s1655_s3, %s1651_s0 }
 0x616   : > { %p1653_p7 = pnand %p1652_p4, %p1860_p5 }
 0x617   : > { %p1658_p11 = por %p1657_p10, %p1656_p9 }
 0x618   : > { %p1654_p8 = pneg %p1653_p7 }
 0x61a   : > { %p1659_p12 = pnand %p1658_p11, %p1654_p8 }
 0x61c   : > { %1662 = shalt.err (!%p1659_p12)
}
 0x61d   : > { %1556 = dma.vmem_to_hbm [thread:$0]  (%p1860_p5), %s2031_s28, 64, %s2029_s12, %s2042_s18   ;;  %1635 = vpow2.f32 %v1152_v30 }
 0x61e   : > { %s1663_s4 = scalar_lea.vmem %s2033_s30, 64  ;;  %s1763_s5 = smov [#allocation6]  }
 0x61f   : > { %p1664_p13 = scmp.ne.s32.totalorder %s2033_s30, %s1663_s4  ;;  %s1667_s11 = sshll.u32 %s1763_s5, 4  ;;  %s1668_s11 = int_to_ptr.vmem [resolvable:$false] %s1667_s11 }
 0x620   : > { %s1669_s0 = scalar_lea.vmem %s1668_s11, 128  ;;  %p1670_p2 = scmp.lt.s32.totalorder %s2033_s30, %s1668_s11 }
 0x621   : > { %p1665_p0 = pnand %p1664_p13, %p1860_p5  ;;  %p1671_p3 = scmp.lt.s32.totalorder %s1669_s0, %s1663_s4 }
 0x623   : > { %p1666_p1 = pneg %p1665_p0  ;;  %p1672_p4 = por %p1671_p3, %p1670_p2 }
 0x625   : > { %p1673_p7 = pnand %p1672_p4, %p1666_p1 }
 0x627   : > { %1676 = shalt.err (!%p1673_p7)
}
 0x628   : > { %s1677_s12 = scalar_lea.hbm %s2039_s1, 64  ;;  %s1681_s26 = scalar_lea.hbm %s2140_s10, 128 }
 0x629   : > { %p1678_p8 = scmp.ne.s32.totalorder %s2039_s1, %s1677_s12  ;;  %p1682_p11 = scmp.lt.s32.totalorder %s2039_s1, %s2140_s10 }
 0x62a   : > { %p1683_p12 = scmp.lt.s32.totalorder %s1681_s26, %s1677_s12 }
 0x62b   : > { %p1679_p9 = pnand %p1678_p8, %p1860_p5 }
 0x62c   : > { %p1684_p13 = por %p1683_p12, %p1682_p11 }
 0x62d   : > { %p1680_p10 = pneg %p1679_p9 }
 0x62f   : > { %p1685_p0 = pnand %p1684_p13, %p1680_p10 }
 0x631   : > { %1688 = shalt.err (!%p1685_p0)
}
 0x632   : > { %1557 = dma.vmem_to_hbm [thread:$0]  (%p1860_p5), %s2033_s30, 64, %s2039_s1, %s2042_s18   ;;  %v1636_v32 = vpop.eup %1635 }
 0x633   : > { %s1360_s17 = sshll.u32 %s1875_s27, 2  ;;  %s380_s0 = scalar_lea.vmem [#allocation2], %s2013_s20 }
 0x634   : > { %s406_s11 = scalar_lea.vmem %s2132_s2, %s1360_s17  ;;  %s1184_s12 = sshll.u32 %s380_s0, 4  ;;  %s1185_s12 = int_to_ptr.vmem [resolvable:$true] %s1184_s12 }
 0x635   : > { %v1151_v31 = vld [vmem:[%s406_s11] sm:$0xf]  ;;  %s1182_s26 = scalar_lea.hbm %s2138_s8, %s2017_s25  ;;  %s2155_s1 = sand.u32 1, %s1745_s14  }
 0x636   : > { %v1154_v33 = vmul.f32 %v1636_v32, %v1151_v31  ;;  %s1161_s27 = scalar_lea.sflag [#allocation3], %s2155_s1  ;;  %s1689_s30 = scalar_lea.vmem %s1185_s12, 64 }
 0x637   : > { %p1690_p1 = scmp.ne.s32.totalorder %s1185_s12, %s1689_s30  ;;  %s1764_s18 = smov [#allocation2]  }
 0x638   : > { %v1155_v34 = vadd.f32 %v1154_v33, %v2023_v27  ;;  %s1693_s20 = sshll.u32 %s1764_s18, 4  ;;  %s1694_s20 = int_to_ptr.vmem [resolvable:$false] %s1693_s20 }
 0x639   : > { %p1691_p2 = pnand %p1690_p1, %p1860_p5  ;;  %s1695_s3 = scalar_lea.vmem %s1694_s20, 128 }
 0x63a   : > { %v1156_v35 = vmul.f32 %v1898_v5, %v1155_v34  ;;  %p1696_p4 = scmp.lt.s32.totalorder %s1185_s12, %s1694_s20  ;;  %p1697_p7 = scmp.lt.s32.totalorder %s1695_s3, %s1689_s30 }
 0x63b   : > { %p1692_p3 = pneg %p1691_p2 }
 0x63c   : > { %1157 = vst [vmem:[%s380_s0] sm:$0xf] %v1156_v35  ;;  %p1698_p8 = por %p1697_p7, %p1696_p4 }
 0x63e   : > { %p1699_p9 = pnand %p1698_p8, %p1692_p3 }
 0x640   : > { %1702 = shalt.err (!%p1699_p9)
}
 0x641   : > { %s1703_s29 = scalar_lea.hbm %s1182_s26, 64  ;;  %s1707_s4 = scalar_lea.hbm %s2138_s8, 128 }
 0x642   : > { %p1704_p10 = scmp.ne.s32.totalorder %s1182_s26, %s1703_s29  ;;  %p1708_p13 = scmp.lt.s32.totalorder %s1182_s26, %s2138_s8 }
 0x643   : > { %p1709_p0 = scmp.lt.s32.totalorder %s1707_s4, %s1703_s29 }
 0x644   : > { %p1705_p11 = pnand %p1704_p10, %p1860_p5 }
 0x645   : > { %p1710_p1 = por %p1709_p0, %p1708_p13 }
 0x646   : > { %p1706_p12 = pneg %p1705_p11 }
 0x648   : > { %p1711_p2 = pnand %p1710_p1, %p1706_p12 }
 0x64a   : > { %1714 = shalt.err (!%p1711_p2)
}
 0x64b   : > { %1555 = dma.vmem_to_hbm [thread:$0]  (%p1860_p5), %s1185_s12, 64, %s1182_s26, %s1161_s27  }
 0x64c PF: > { %p1571_p3 = scmp.ge.s32.totalorder %s1753_s16, 2  ;;  %s1222_s0 = sand.u32 1, %s1741_s13  }
 0x64d   : > { %s1223_s28 = scalar_lea.sflag [#allocation3], %s1222_s0 }
 0x64e   : > { %p1562_p4 = pnand %p1571_p3, %p1864_p6 }
 0x650   : > { %p1563_p7 = pneg %p1562_p4 }
 0x652   : > { %1732 = dma.done.wait (%p1563_p7), %s1223_s28, 64  }
 0x653   : > { %1734 = vsyncadd (%p1563_p7), %s1223_s28, 4294967232  ;;  %s2156_s21 = sadd.s32 4294967294, %s1753_s16  }
 0x654   : > { %s1231_s1 = sand.u32 1, %s2156_s21  }
 0x655   : > { %s1232_s30 = scalar_lea.sflag [#allocation5], %s1231_s1 }
 0x656   : > { %1736 = dma.done.wait (%p1563_p7), %s1232_s30, 128  }
 0x657   : > { %1738 = vsyncadd (%p1563_p7), %s1232_s30, 4294967168  ;;  %p24_p5 = scmp.ge.s32.totalorder %s1845_s19, 4   ;;  %s2157_s13 = smov %s1745_s14 }
 0x658   : > { %s2158_s14 = smov %s1749_s15  ;;  %s2159_s15 = smov %s1858_s22 }
 0x659   : > { %s2160_s16 = smov %s1845_s19  ;;  %26 = sbr.rel (!%p24_p5) target bundleno = 11 (0xb), region = 127 }
 0x65e   :  { %1246 = vsyncpa [#allocation3], 1 }
 0x65f   :  { %1248 = vsyncpa [#allocation3 + $0x1], 1 }
 0x660   :  { %1249 = vsyncpa [#allocation5], 1 }
 0x661   :  { %1251 = vsyncpa [#allocation5 + $0x1], 1 }

</bundles_post_ra>
